<compile_context>
chip_gen: v5e
topology: v5e:2x2
jax: 0.10.0
libtpu: 0.0.40
codegen_flags: <defaults>
</compile_context>

<pallas_src>
import functools

import numpy as np
import jax
import jax.numpy as jnp
from jax import lax
from jax.experimental import pallas as pl
from jax.experimental.pallas import tpu as pltpu


def _gelu(x):
    return jax.nn.gelu(x, approximate=False)   # nn.GELU() / F.gelu default (exact erf)


def _round_up(n, m):
    return ((n + m - 1) // m) * m


def _row_tile(n_pad):
    return n_pad if n_pad <= 512 else 512


_NT = (((1,), (1,)), ((), ()))   # dot_general: contract last dims of both (A @ B^T)
_VMEM_LIMIT = 64 * 1024 * 1024


# -----------------------------------------------------------------------------
# Pallas kernels
# -----------------------------------------------------------------------------
def _proj_kernel(x_ref, w_ref, asrc_ref, adst_ref,
                 vblk_ref, asrcT_ref, adstT_ref, *, heads, ch, apply_gelu):
    """Fused (GELU?) + node projection + per-head logit components + value slab.

    Everything emitted here is grid-invariant from the attention kernel's point of
    view, so it is computed exactly once per layer.
    """
    a = x_ref[...]
    if apply_gelu:
        a = _gelu(a)                                        # f32 VPU/EUP math
    xp = jnp.dot(a.astype(w_ref.dtype), w_ref[...],
                 preferred_element_type=jnp.float32)        # [tm, H*C] f32 acc
    xp_bf = xp.astype(jnp.bfloat16)

    # per-head attention logit components (att vectors stored as [H, H*C] block rows)
    asrcT_ref[...] = lax.dot_general(asrc_ref[...], xp_bf, _NT,
                                     preferred_element_type=jnp.float32)   # [H, tm]
    adstT_ref[...] = lax.dot_general(xp_bf, adst_ref[...], _NT,
                                     preferred_element_type=jnp.float32)   # [tm, H]

    # head-block-"diagonal" value slab: vblk[h] keeps only head h's feature columns,
    # so the attention kernel can do ONE [tm, H*Np] @ [H*Np, H*C] matmul for all heads.
    col = lax.broadcasted_iota(jnp.int32, (1, heads * ch), 1)
    zero = jnp.zeros_like(xp_bf)
    for h in range(heads):                                  # static unroll (heads small)
        keep = (col >= h * ch) & (col < (h + 1) * ch)
        vblk_ref[h] = jnp.where(keep, xp_bf, zero)


def _gat_attn_kernel(adst_ref, asrc_ref, adj_ref, v_ref, b_ref, o_ref,
                     *, heads, n_src, slope):
    """GATConv attention over a dense edge-count adjacency, all heads packed.

    adj[i, j] = number of edges j->i (diagonal = 1: the single self loop PyG adds),
    so parallel edges and PyG's softmax-over-edges semantics are reproduced exactly.
    Every row has >= 1 edge (its self loop), so the softmax denominator is >= 1.
    """
    a_dst = adst_ref[...]                                   # [tm, H]   f32
    a_src = asrc_ref[...]                                   # [1, H*Np] f32 (head-major)
    adj = adj_ref[...].astype(jnp.float32)                  # [tm, Np]
    has_edge = adj > 0.0
    neg = jnp.float32(-1e30)

    attn_blocks = []
    for h in range(heads):                                  # static unroll; matmul stays packed
        s = a_dst[:, h:h + 1] + a_src[:, h * n_src:(h + 1) * n_src]       # [tm, Np]
        s = jnp.where(s >= 0.0, s, slope * s)                             # leaky_relu(0.2)
        s = jnp.where(has_edge, s, neg)                     # clamp BEFORE exp -> no 0*inf NaN
        m = jnp.max(s, axis=-1, keepdims=True)              # per-head max over edges
        p = adj * jnp.exp(s - m)                            # counts weight parallel edges
        denom = jnp.sum(p, axis=-1, keepdims=True)          # >= 1 by construction
        attn_blocks.append(p * (1.0 / denom))               # exact softmax divide
    attn = jnp.concatenate(attn_blocks, axis=-1).astype(jnp.bfloat16)     # [tm, H*Np]

    # single full-width (N = H*C = 128) MXU matmul for all heads + fused bias epilogue
    o_ref[...] = jnp.dot(attn, v_ref[...],
                         preferred_element_type=jnp.float32) + b_ref[...]


def _pool_head_kernel(x_ref, m_ref, w_ref, b_ref, o_ref, *, n_graphs, mpg):
    """MultiAggregation(['min','max','mean','sum']) + GELU + Linear head, all graphs.

    Nodes are graph-contiguous (graph g owns rows [g*mpg, (g+1)*mpg)), so each node row
    is touched exactly once, and the head GEMM is batched over all graphs (M = B).
    """
    m3 = m_ref[...]                                         # [B, mpg, 1]
    big = jnp.float32(1e30)
    pooled_rows = []
    for g in range(n_graphs):                               # static unroll (B small)
        xg = x_ref[g * mpg:(g + 1) * mpg, :]                # only this graph's rows
        mg = m3[g]                                          # [mpg, 1]
        vg = mg > 0.0
        mn = jnp.min(jnp.where(vg, xg, big), axis=0, keepdims=True)
        mx = jnp.max(jnp.where(vg, xg, -big), axis=0, keepdims=True)
        s = jnp.sum(xg * mg, axis=0, keepdims=True)
        cnt = jnp.maximum(jnp.sum(mg, axis=0, keepdims=True), 1.0)        # [1, 1]
        mean = s * pl.reciprocal(cnt, approx=True)
        pooled_rows.append(jnp.concatenate([mn, mx, mean, s], axis=-1))   # [1, 4*H*C]
    pooled = jnp.concatenate(pooled_rows, axis=0)                          # [B, 4*H*C]
    o_ref[...] = jnp.dot(_gelu(pooled).astype(w_ref.dtype), w_ref[...],
                         preferred_element_type=jnp.float32) + b_ref[...]  # [B, 128] lane-dense


# -----------------------------------------------------------------------------
# Pallas wrappers
# -----------------------------------------------------------------------------
def gat_layer_pallas(x, adj_bf, lin_w, asrc_b, adst_b, bias_row, *, heads, ch, apply_gelu):
    n_pad, fin = x.shape
    hc = heads * ch
    tm = _row_tile(n_pad)
    grid = (n_pad // tm,)
    params = pltpu.CompilerParams(dimension_semantics=("parallel",),
                                  vmem_limit_bytes=_VMEM_LIMIT)

    # Kernel A: projection + grid-invariant attention pieces (computed once per layer).
    vblk, a_src_t, a_dst = pl.pallas_call(
        functools.partial(_proj_kernel, heads=heads, ch=ch, apply_gelu=apply_gelu),
        out_shape=(jax.ShapeDtypeStruct((heads, n_pad, hc), jnp.bfloat16),   # value slab
                   jax.ShapeDtypeStruct((heads, n_pad), jnp.float32),        # a_src (transposed)
                   jax.ShapeDtypeStruct((n_pad, heads), jnp.float32)),       # a_dst
        grid=grid,
        in_specs=[pl.BlockSpec((tm, fin), lambda i: (i, 0)),
                  pl.BlockSpec((fin, hc), lambda i: (0, 0)),
                  pl.BlockSpec((heads, hc), lambda i: (0, 0)),
                  pl.BlockSpec((heads, hc), lambda i: (0, 0))],
        out_specs=(pl.BlockSpec((heads, tm, hc), lambda i: (0, i, 0)),
                   pl.BlockSpec((heads, tm), lambda i: (0, i)),
                   pl.BlockSpec((tm, heads), lambda i: (i, 0))),
        compiler_params=params,
    )(x, lin_w, asrc_b, adst_b)

    v_block = vblk.reshape(heads * n_pad, hc)        # contiguous: head-major row blocks
    a_src_flat = a_src_t.reshape(1, heads * n_pad)   # head-major lane packing

    # Kernel B: adjacency-masked multi-head softmax + one packed PV matmul + bias.
    return pl.pallas_call(
        functools.partial(_gat_attn_kernel, heads=heads, n_src=n_pad, slope=0.2),
        out_shape=jax.ShapeDtypeStruct((n_pad, hc), jnp.float32),
        grid=grid,
        in_specs=[
            pl.BlockSpec((tm, heads), lambda i: (i, 0)),            # a_dst tile
            pl.BlockSpec((1, heads * n_pad), lambda i: (0, 0)),     # packed a_src (resident)
            pl.BlockSpec((tm, n_pad), lambda i: (i, 0)),            # adjacency rows (bf16)
            pl.BlockSpec((heads * n_pad, hc), lambda i: (0, 0)),    # block-diag values (resident)
            pl.BlockSpec((1, hc), lambda i: (0, 0)),                # bias (resident)
        ],
        out_specs=pl.BlockSpec((tm, hc), lambda i: (i, 0)),
        compiler_params=params,
    )(a_dst, a_src_flat, adj_bf, v_block, bias_row)


def pool_head_pallas(x, mask3, head_w, head_b):
    n_pad, hc = x.shape
    n_graphs, mpg, _ = mask3.shape
    out_pad = head_w.shape[1]
    return pl.pallas_call(
        functools.partial(_pool_head_kernel, n_graphs=n_graphs, mpg=mpg),
        out_shape=jax.ShapeDtypeStruct((n_graphs, out_pad), jnp.float32),
        grid=(1,),
        in_specs=[pl.BlockSpec((n_pad, hc), lambda g: (0, 0)),
                  pl.BlockSpec((n_graphs, mpg, 1), lambda g: (0, 0, 0)),
                  pl.BlockSpec((4 * hc, out_pad), lambda g: (0, 0)),
                  pl.BlockSpec((1, out_pad), lambda g: (0, 0))],
        out_specs=pl.BlockSpec((n_graphs, out_pad), lambda g: (0, 0)),
        compiler_params=pltpu.CompilerParams(dimension_semantics=("arbitrary",),
                                             vmem_limit_bytes=_VMEM_LIMIT),
    )(x, mask3, head_w, head_b)


def gat_forward_pallas(p, x_pad, adj_bf, mask3, *, heads, hidden):
    h = x_pad
    for i, lp in enumerate(p["layers"]):
        # "if i > 0: x = F.gelu(x)" is fused into the projection kernel.
        h = gat_layer_pallas(h, adj_bf, lp["lin_w"], lp["att_src"], lp["att_dst"],
                             lp["bias"], heads=heads, ch=hidden, apply_gelu=(i > 0))
    out = pool_head_pallas(h, mask3, p["head_w"], p["head_b"])
    return out[:, :p["nb_out"]]          # drop the lane padding of the head output


# -----------------------------------------------------------------------------
# Parameters (deterministic synthetic init; shapes follow GraphAttentionNetwork)
# -----------------------------------------------------------------------------
def init_params(key, nb_inputs, nb_outputs, num_layers, heads, hidden):
    keys = iter(jax.random.split(key, num_layers * 4 + 2))

    def w(shape, scale=0.1):
        return jax.random.normal(next(keys), shape, jnp.float32) * scale

    layers = []
    for i in range(num_layers):
        fin = nb_inputs if i == 0 else heads * hidden
        layers.append(dict(
            lin_w=w((fin, heads * hidden)),       # GATConv.lin (bias=False)
            att_src=w((heads, hidden)),           # GATConv.att_src
            att_dst=w((heads, hidden)),           # GATConv.att_dst
            bias=w((heads * hidden,), 0.01),      # GATConv.bias (concat=True)
        ))
    return dict(layers=layers,
                head_w=w((4 * heads * hidden, nb_outputs)),  # head Linear(4*H*C, out)
                head_b=w((nb_outputs,), 0.01))


def prepare_params(raw, heads, hidden, fin0_pad):
    """bf16 MXU weights, layer-0 input width padded to 128 lanes, per-head attention
    vectors laid out as [heads, H*C] block rows, head weight/bias padded to 128 lanes."""
    hc = heads * hidden

    def att_block(att):
        return (jnp.eye(heads, dtype=jnp.float32)[:, :, None]
                * att[:, None, :]).reshape(heads, hc)

    layers = []
    for i, lp in enumerate(raw["layers"]):
        w = lp["lin_w"]
        if i == 0:
            w = jnp.zeros((fin0_pad, hc), jnp.float32).at[:w.shape[0]].set(w)
        layers.append(dict(lin_w=w.astype(jnp.bfloat16),
                           att_src=att_block(lp["att_src"]).astype(jnp.bfloat16),
                           att_dst=att_block(lp["att_dst"]).astype(jnp.bfloat16),
                           bias=lp["bias"].reshape(1, hc).astype(jnp.float32)))

    nb_out = raw["head_w"].shape[1]
    out_pad = _round_up(nb_out, 128)
    head_w = jnp.zeros((4 * hc, out_pad), jnp.float32).at[:, :nb_out].set(raw["head_w"])
    head_b = jnp.zeros((1, out_pad), jnp.float32).at[0, :nb_out].set(raw["head_b"])
    return dict(layers=layers, head_w=head_w.astype(jnp.bfloat16),
                head_b=head_b, nb_out=nb_out)


# -----------------------------------------------------------------------------
# Pure-JAX reference (f32) for correctness checking
# -----------------------------------------------------------------------------
def reference_forward(raw, x_feat, adj, mask3, *, heads, hidden):
    hc = heads * hidden
    x = x_feat
    for i, lp in enumerate(raw["layers"]):
        a = _gelu(x) if i > 0 else x
        xp = a @ lp["lin_w"]
        xph = xp.reshape(-1, heads, hidden)
        a_src = jnp.einsum("nhc,hc->nh", xph, lp["att_src"])
        a_dst = jnp.einsum("nhc,hc->nh", xph, lp["att_dst"])
        s = a_dst[:, None, :] + a_src[None, :, :]              # [dst, src, H]
        s = jnp.where(s >= 0.0, s, 0.2 * s)
        e = (adj > 0.0)[:, :, None]
        s = jnp.where(e, s, -1e30)
        m = jnp.max(s, axis=1, keepdims=True)
        p = adj[:, :, None] * jnp.exp(s - m)
        attn = p / jnp.sum(p, axis=1, keepdims=True)
        out = jnp.einsum("ijh,jhc->ihc", attn, xph).reshape(-1, hc)
        x = out + lp["bias"][None, :]
    n_graphs, mpg, _ = mask3.shape
    x3 = x.reshape(n_graphs, mpg, hc)
    valid = mask3 > 0.0
    big = 1e30
    mn = jnp.min(jnp.where(valid, x3, big), axis=1)
    mx = jnp.max(jnp.where(valid, x3, -big), axis=1)
    s_ = jnp.sum(x3 * mask3, axis=1)
    cnt = jnp.maximum(jnp.sum(mask3, axis=1), 1.0)
    pooled = jnp.concatenate([mn, mx, s_ / cnt, s_], axis=-1)
    return _gelu(pooled) @ raw["head_w"] + raw["head_b"][None, :]


# -----------------------------------------------------------------------------
if __name__ == "__main__":
    # small but consistent sizes: heads*hidden = 128 keeps every hot block lane-dense
    nb_inputs, nb_outputs = 8, 16
    num_layers, heads, hidden = 3, 4, 32

    key = jax.random.PRNGKey(0)
    k_param, k_x, k_e = jax.random.split(key, 3)
    raw = init_params(k_param, nb_inputs, nb_outputs, num_layers, heads, hidden)

    # two graphs: bidirected rings of 7 and 5 nodes, laid out graph-contiguously,
    # each graph padded to mpg rows (multiple of 8) so pooling reads per-graph blocks.
    sizes = [7, 5]
    n_graphs = len(sizes)
    mpg = _round_up(max(sizes), 8)
    n_pad = n_graphs * mpg
    edges = []
    for g, sz in enumerate(sizes):
        base = g * mpg
        for i in range(sz):
            j = (i + 1) % sz
            edges += [(base + i, base + j), (base + j, base + i)]
    edge_index = np.array(edges, dtype=np.int32).T                       # [2, 24]
    n_real = sum(sizes)

    x_nodes = jax.random.normal(k_x, (n_real, nb_inputs), jnp.float32)   # data.x
    edge_attr = jax.random.normal(k_e, (edge_index.shape[1], 2), jnp.float32)  # data.edge_attr
    # edge_attr is accepted by GATConv.forward but unused (edge_dim=None), so it
    # does not enter the computation.

    node_rows = np.concatenate([np.arange(sz) + g * mpg for g, sz in enumerate(sizes)])
    x_feat = jnp.zeros((n_pad, nb_inputs), jnp.float32).at[jnp.asarray(node_rows)].set(x_nodes)

    # dense edge-count adjacency with exactly one self loop per row
    # (remove_self_loops + add_self_loops, matching PyG GATConv).
    src = jnp.asarray(edge_index[0]); dst = jnp.asarray(edge_index[1])
    eye = jnp.eye(n_pad, dtype=jnp.float32)
    adj = jnp.zeros((n_pad, n_pad), jnp.float32).at[dst, src].add(1.0)
    adj = adj * (1.0 - eye) + eye

    # per-graph node mask [B, mpg, 1]
    mask_np = np.zeros((n_graphs, mpg, 1), np.float32)
    for g, sz in enumerate(sizes):
        mask_np[g, :sz, 0] = 1.0
    mask3 = jnp.asarray(mask_np)

    # Padding rows only carry their self loop; they must never feed real rows
    # (their bias-only features would otherwise leak into the graph).
    real = mask_np.reshape(-1) > 0
    adj_np = np.asarray(adj)
    assert adj_np[np.ix_(real, ~real)].sum() == 0.0, "padding rows feed real rows"

    fin0_pad = _round_up(nb_inputs, 128)                    # lane-dense layer-0 input
    x_pad = jnp.zeros((n_pad, fin0_pad), jnp.float32).at[:, :nb_inputs].set(x_feat)

    kparams = prepare_params(raw, heads, hidden, fin0_pad)
    out = gat_forward_pallas(kparams, x_pad, adj.astype(jnp.bfloat16), mask3,
                             heads=heads, hidden=hidden)
    out = jax.block_until_ready(out)

    ref = reference_forward(raw, x_feat, adj, mask3, heads=heads, hidden=hidden)
    assert out.shape == (n_graphs, nb_outputs)
    np.testing.assert_allclose(np.asarray(out), np.asarray(ref), rtol=5e-2, atol=5e-2)
    print("KERNEL_OK")
</pallas_src>

<mosaic_0001>
module attributes {stable_mosaic.version = 11 : i64} {
  func.func @_proj_kernel(%arg0: i32, %arg1: memref<16x128xf32, #tpu.memory_space<vmem>>, %arg2: memref<128x128xbf16, #tpu.memory_space<vmem>>, %arg3: memref<4x128xbf16, #tpu.memory_space<vmem>>, %arg4: memref<4x128xbf16, #tpu.memory_space<vmem>>, %arg5: memref<4x16x128xbf16, #tpu.memory_space<vmem>>, %arg6: memref<4x16xf32, #tpu.memory_space<vmem>>, %arg7: memref<16x4xf32, #tpu.memory_space<vmem>>) attributes {dimension_semantics = [#tpu.dimension_semantics<parallel>], iteration_bounds = array<i64: 1>, scalar_prefetch = 0 : i64, scratch_operands = 0 : i64, tpu.core_type = #tpu.core_type<tc>, window_params = [{transform_indices = @transform_0, window_bounds = array<i64: 16, 128>}, {pipeline_mode = #tpu.pipeline_mode<synchronous>, transform_indices = @transform_1, window_bounds = array<i64: 128, 128>}, {pipeline_mode = #tpu.pipeline_mode<synchronous>, transform_indices = @transform_2, window_bounds = array<i64: 4, 128>}, {pipeline_mode = #tpu.pipeline_mode<synchronous>, transform_indices = @transform_3, window_bounds = array<i64: 4, 128>}, {transform_indices = @transform_4, window_bounds = array<i64: 4, 16, 128>}, {transform_indices = @transform_5, window_bounds = array<i64: 4, 16>}, {transform_indices = @transform_6, window_bounds = array<i64: 16, 4>}]} {
    %c0 = arith.constant 0 : index
    %c0_0 = arith.constant 0 : index
    %0 = vector.load %arg1[%c0, %c0_0] : memref<16x128xf32, #tpu.memory_space<vmem>>, vector<16x128xf32>
    %1 = arith.truncf %0 : vector<16x128xf32> to vector<16x128xbf16>
    %c0_1 = arith.constant 0 : index
    %c0_2 = arith.constant 0 : index
    %2 = vector.load %arg2[%c0_1, %c0_2] : memref<128x128xbf16, #tpu.memory_space<vmem>>, vector<128x128xbf16>
    %cst = arith.constant dense<0.000000e+00> : vector<16x128xf32>
    %3 = tpu.matmul %1, %2, %cst {dimension_numbers = #tpu.dot_dimension_numbers<[1], [0], [0], [1], [0, 0, 1, 1], [], []>} : vector<16x128xbf16>, vector<128x128xbf16>, vector<16x128xf32> -> vector<16x128xf32>
    %4 = arith.truncf %3 : vector<16x128xf32> to vector<16x128xbf16>
    %c0_3 = arith.constant 0 : index
    %c0_4 = arith.constant 0 : index
    %5 = vector.load %arg3[%c0_3, %c0_4] : memref<4x128xbf16, #tpu.memory_space<vmem>>, vector<4x128xbf16>
    %cst_5 = arith.constant dense<0.000000e+00> : vector<4x16xf32>
    %6 = tpu.matmul %5, %4, %cst_5 {dimension_numbers = #tpu.dot_dimension_numbers<[1], [1], [0], [0], [0, 0, 1, 0], [], []>} : vector<4x128xbf16>, vector<16x128xbf16>, vector<4x16xf32> -> vector<4x16xf32>
    %c0_6 = arith.constant 0 : index
    %c0_7 = arith.constant 0 : index
    %7 = vector.load %arg6[%c0_6, %c0_7] : memref<4x16xf32, #tpu.memory_space<vmem>>, vector<4x16xf32>
    tpu.vector_store %arg6[%c0_6, %c0_7], %6 {strides = array<i32>} : memref<4x16xf32, #tpu.memory_space<vmem>>, vector<4x16xf32>,
    %c0_8 = arith.constant 0 : index
    %c0_9 = arith.constant 0 : index
    %8 = vector.load %arg4[%c0_8, %c0_9] : memref<4x128xbf16, #tpu.memory_space<vmem>>, vector<4x128xbf16>
    %cst_10 = arith.constant dense<0.000000e+00> : vector<16x4xf32>
    %9 = tpu.matmul %4, %8, %cst_10 {dimension_numbers = #tpu.dot_dimension_numbers<[1], [1], [0], [0], [0, 0, 1, 0], [], []>} : vector<16x128xbf16>, vector<4x128xbf16>, vector<16x4xf32> -> vector<16x4xf32>
    %c0_11 = arith.constant 0 : index
    %c0_12 = arith.constant 0 : index
    %10 = vector.load %arg7[%c0_11, %c0_12] : memref<16x4xf32, #tpu.memory_space<vmem>>, vector<16x4xf32>
    tpu.vector_store %arg7[%c0_11, %c0_12], %9 {strides = array<i32>} : memref<16x4xf32, #tpu.memory_space<vmem>>, vector<16x4xf32>,
    %11 = tpu.iota {dimensions = array<i32: 1>} : vector<1x128xi32>
    %cst_13 = arith.constant 0.000000e+00 : bf16
    %12 = vector.broadcast %cst_13 : bf16 to vector<16x128xbf16>
    %c0_i32 = arith.constant 0 : i32
    %13 = vector.broadcast %c0_i32 : i32 to vector<1x128xi32>
    %14 = arith.cmpi sge, %11, %13 : vector<1x128xi32>
    %c32_i32 = arith.constant 32 : i32
    %15 = vector.broadcast %c32_i32 : i32 to vector<1x128xi32>
    %16 = arith.cmpi slt, %11, %15 : vector<1x128xi32>
    %17 = arith.andi %14, %16 : vector<1x128xi1>
    %18 = vector.shape_cast %17 : vector<1x128xi1> to vector<1x128xi1>
    %19 = vector.broadcast %18 : vector<1x128xi1> to vector<16x128xi1>
    %20 = arith.select %19, %4, %12 : vector<16x128xi1>, vector<16x128xbf16>
    %c0_14 = arith.constant 0 : index
    %c0_15 = arith.constant 0 : index
    %c0_16 = arith.constant 0 : index
    %21 = vector.load %arg5[%c0_14, %c0_15, %c0_16] : memref<4x16x128xbf16, #tpu.memory_space<vmem>>, vector<1x16x128xbf16>
    %22 = vector.shape_cast %21 : vector<1x16x128xbf16> to vector<16x128xbf16>
    %23 = vector.shape_cast %20 : vector<16x128xbf16> to vector<1x16x128xbf16>
    tpu.vector_store %arg5[%c0_14, %c0_15, %c0_16], %23 {strides = array<i32>} : memref<4x16x128xbf16, #tpu.memory_space<vmem>>, vector<1x16x128xbf16>,
    %c32_i32_17 = arith.constant 32 : i32
    %24 = vector.broadcast %c32_i32_17 : i32 to vector<1x128xi32>
    %25 = arith.cmpi sge, %11, %24 : vector<1x128xi32>
    %c64_i32 = arith.constant 64 : i32
    %26 = vector.broadcast %c64_i32 : i32 to vector<1x128xi32>
    %27 = arith.cmpi slt, %11, %26 : vector<1x128xi32>
    %28 = arith.andi %25, %27 : vector<1x128xi1>
    %29 = vector.shape_cast %28 : vector<1x128xi1> to vector<1x128xi1>
    %30 = vector.broadcast %29 : vector<1x128xi1> to vector<16x128xi1>
    %31 = arith.select %30, %4, %12 : vector<16x128xi1>, vector<16x128xbf16>
    %c1 = arith.constant 1 : index
    %c0_18 = arith.constant 0 : index
    %c0_19 = arith.constant 0 : index
    %32 = vector.load %arg5[%c1, %c0_18, %c0_19] : memref<4x16x128xbf16, #tpu.memory_space<vmem>>, vector<1x16x128xbf16>
    %33 = vector.shape_cast %32 : vector<1x16x128xbf16> to vector<16x128xbf16>
    %34 = vector.shape_cast %31 : vector<16x128xbf16> to vector<1x16x128xbf16>
    tpu.vector_store %arg5[%c1, %c0_18, %c0_19], %34 {strides = array<i32>} : memref<4x16x128xbf16, #tpu.memory_space<vmem>>, vector<1x16x128xbf16>,
    %c64_i32_20 = arith.constant 64 : i32
    %35 = vector.broadcast %c64_i32_20 : i32 to vector<1x128xi32>
    %36 = arith.cmpi sge, %11, %35 : vector<1x128xi32>
    %c96_i32 = arith.constant 96 : i32
    %37 = vector.broadcast %c96_i32 : i32 to vector<1x128xi32>
    %38 = arith.cmpi slt, %11, %37 : vector<1x128xi32>
    %39 = arith.andi %36, %38 : vector<1x128xi1>
    %40 = vector.shape_cast %39 : vector<1x128xi1> to vector<1x128xi1>
    %41 = vector.broadcast %40 : vector<1x128xi1> to vector<16x128xi1>
    %42 = arith.select %41, %4, %12 : vector<16x128xi1>, vector<16x128xbf16>
    %c2 = arith.constant 2 : index
    %c0_21 = arith.constant 0 : index
    %c0_22 = arith.constant 0 : index
    %43 = vector.load %arg5[%c2, %c0_21, %c0_22] : memref<4x16x128xbf16, #tpu.memory_space<vmem>>, vector<1x16x128xbf16>
    %44 = vector.shape_cast %43 : vector<1x16x128xbf16> to vector<16x128xbf16>
    %45 = vector.shape_cast %42 : vector<16x128xbf16> to vector<1x16x128xbf16>
    tpu.vector_store %arg5[%c2, %c0_21, %c0_22], %45 {strides = array<i32>} : memref<4x16x128xbf16, #tpu.memory_space<vmem>>, vector<1x16x128xbf16>,
    %c96_i32_23 = arith.constant 96 : i32
    %46 = vector.broadcast %c96_i32_23 : i32 to vector<1x128xi32>
    %47 = arith.cmpi sge, %11, %46 : vector<1x128xi32>
    %c128_i32 = arith.constant 128 : i32
    %48 = vector.broadcast %c128_i32 : i32 to vector<1x128xi32>
    %49 = arith.cmpi slt, %11, %48 : vector<1x128xi32>
    %50 = arith.andi %47, %49 : vector<1x128xi1>
    %51 = vector.shape_cast %50 : vector<1x128xi1> to vector<1x128xi1>
    %52 = vector.broadcast %51 : vector<1x128xi1> to vector<16x128xi1>
    %53 = arith.select %52, %4, %12 : vector<16x128xi1>, vector<16x128xbf16>
    %c3 = arith.constant 3 : index
    %c0_24 = arith.constant 0 : index
    %c0_25 = arith.constant 0 : index
    %54 = vector.load %arg5[%c3, %c0_24, %c0_25] : memref<4x16x128xbf16, #tpu.memory_space<vmem>>, vector<1x16x128xbf16>
    %55 = vector.shape_cast %54 : vector<1x16x128xbf16> to vector<16x128xbf16>
    %56 = vector.shape_cast %53 : vector<16x128xbf16> to vector<1x16x128xbf16>
    tpu.vector_store %arg5[%c3, %c0_24, %c0_25], %56 {strides = array<i32>} : memref<4x16x128xbf16, #tpu.memory_space<vmem>>, vector<1x16x128xbf16>,
    return
  }
  func.func @transform_0(%arg0: i32) -> (i32, i32) {
    %c0_i32 = arith.constant 0 : i32
    %c0_i32_0 = arith.constant 0 : i32
    return %arg0, %c0_i32 : i32, i32
  }
  func.func @transform_1(%arg0: i32) -> (i32, i32) {
    %c0_i32 = arith.constant 0 : i32
    %c0_i32_0 = arith.constant 0 : i32
    %c0_i32_1 = arith.constant 0 : i32
    return %c0_i32, %c0_i32_0 : i32, i32
  }
  func.func @transform_2(%arg0: i32) -> (i32, i32) {
    %c0_i32 = arith.constant 0 : i32
    %c0_i32_0 = arith.constant 0 : i32
    %c0_i32_1 = arith.constant 0 : i32
    return %c0_i32, %c0_i32_0 : i32, i32
  }
  func.func @transform_3(%arg0: i32) -> (i32, i32) {
    %c0_i32 = arith.constant 0 : i32
    %c0_i32_0 = arith.constant 0 : i32
    %c0_i32_1 = arith.constant 0 : i32
    return %c0_i32, %c0_i32_0 : i32, i32
  }
  func.func @transform_4(%arg0: i32) -> (i32, i32, i32) {
    %c0_i32 = arith.constant 0 : i32
    %c0_i32_0 = arith.constant 0 : i32
    %c0_i32_1 = arith.constant 0 : i32
    return %c0_i32, %arg0, %c0_i32_0 : i32, i32, i32
  }
  func.func @transform_5(%arg0: i32) -> (i32, i32) {
    %c0_i32 = arith.constant 0 : i32
    %c0_i32_0 = arith.constant 0 : i32
    return %c0_i32, %arg0 : i32, i32
  }
  func.func @transform_6(%arg0: i32) -> (i32, i32) {
    %c0_i32 = arith.constant 0 : i32
    %c0_i32_0 = arith.constant 0 : i32
    return %arg0, %c0_i32 : i32, i32
  }
}

</mosaic_0001>

<bundles_post_ra>
// kernel: tpu_custom_call.1
= control target key start
LH: loop header
LB: loop body
LE: loop exit
PB: predicated region body
PF: predicated region fallthrough
CT: control target
= control target key end

     0   :  { %12 = vsyncpa [#allocation3], 0  ;;  %s567_s0 = inlined_call_operand.hbm [shape: f32[16,128], index: 0, kind: input, shape index: {}]   ;;  %s568_s1 = inlined_call_operand.hbm [shape: bf16[128,128], index: 1, kind: input, shape index: {}]   ;;  %s569_s2 = inlined_call_operand.hbm [shape: bf16[4,128], index: 2, kind: input, shape index: {}]   ;;  %s570_s3 = inlined_call_operand.vmem [shape: bf16[4,128], index: 3, kind: input, shape index: {}]   ;;  %s571_s4 = inlined_call_operand.hbm [shape: bf16[4,16,128], index: 4, kind: output, shape index: {0}]   ;;  %s572_s5 = inlined_call_operand.hbm [shape: f32[4,16], index: 5, kind: output, shape index: {1}]   ;;  %s573_s6 = inlined_call_operand.vmem [shape: f32[16,4], index: 6, kind: output, shape index: {2}]  }
   0x1   :  { %13 = vsyncpa [#allocation6], 0 }
   0x2   :  { %14 = vsyncpa [#allocation4], 0  ;;  %s33_s23 = sshll.u32 %s568_s1, 4  ;;  %s34_s23 = int_to_ptr.hbm [resolvable:$true] %s33_s23 }
   0x3   :  { %15 = vsyncpa [#allocation10], 0  ;;  %s453_s24 = smov [#allocation5]   ;;  %s20_s28 = sshll.u32 %s567_s0, 4  ;;  %s21_s28 = int_to_ptr.hbm [resolvable:$true] %s20_s28 }
   0x4   :  { %s35_s25 = sshll.u32 %s453_s24, 4  ;;  %s454_s29 = smov 64   ;;  %s36_s25 = int_to_ptr.vmem [resolvable:$true] %s35_s25 }
   0x5   :  { %s455_s30 = smov 4   ;;  %s456_s7 = smov [#allocation2]  }
   0x6   :  { %41 = dma.hbm_to_vmem [thread:$0]  %s34_s23, 1024, %s36_s25, [#allocation6], %s454_s29, %s454_s29, %s455_s30  }
   0x7   :  { %s22_s8 = sshll.u32 %s456_s7, 4  ;;  %s457_s1 = smov 128   ;;  %s23_s8 = int_to_ptr.vmem [resolvable:$true] %s22_s8 }
   0x8   :  { %s458_s9 = smov 8   ;;  %s47_s12 = sshll.u32 %s569_s2, 4  ;;  %s48_s12 = int_to_ptr.hbm [resolvable:$true] %s47_s12 }
   0x9   :  { %28 = dma.hbm_to_vmem [thread:$0]  %s21_s28, 256, %s23_s8, [#allocation3], %s457_s1, %s457_s1, %s458_s9  }
   0xa   :  { %s459_s13 = smov [#allocation7]  }
   0xb   :  { %s49_s0 = sshll.u32 %s459_s13, 4  ;;  %s50_s0 = int_to_ptr.vmem [resolvable:$true] %s49_s0 }
   0xc   :  { %52 = dma.hbm_to_vmem [thread:$0]  %s48_s12, 32, %s50_s0, [#allocation6]  }
   0xd   :  { %445 = dma.done.wait [#allocation3], 256  }
   0xe   :  { %446 = vsyncadd [#allocation3], 4294967040 }
   0xf   :  { %447 = dma.done.wait [#allocation6], 1056  }
  0x10   :  { %448 = vsyncadd [#allocation6], 4294966240  ;;  %v315_v0 = vld [vmem:[#allocation5 + $0x38] sm:$0xff]  ;;  %v314_v1 = vld [vmem:[#allocation5 + $0x30] sm:$0xff]  ;;  %v191_v12 = vlaneseq  ;;  %s242_s18 = sshll.u32 %s571_s4, 4  ;;  %s461_s19 = smov [#allocation9]   ;;  %s243_s18 = int_to_ptr.hbm [resolvable:$true] %s242_s18 }
  0x11   :  { %135 = vmatpush.bf16.msra.mxu0 %v315_v0  ;;  %v313_v2 = vld [vmem:[#allocation5 + $0x28] sm:$0xff]  ;;  %v312_v3 = vld [vmem:[#allocation5 + $0x20] sm:$0xff]  ;;  %v311_v4 = vld [vmem:[#allocation5 + $0x18] sm:$0xff]  ;;  %s254_s20 = sshll.u32 %s461_s19, 4  ;;  %s256_s23 = sshll.u32 %s572_s5, 4  ;;  %vm188_vm12 = vcmask 31744   ;;  %s255_s20 = int_to_ptr.vmem [resolvable:$true] %s254_s20  ;;  %s257_s23 = int_to_ptr.hbm [resolvable:$true] %s256_s23 }
  0x12   :  { %v310_v5 = vld [vmem:[#allocation5 + $0x10] sm:$0xff]  ;;  %v309_v6 = vld [vmem:[#allocation5 + $0x8] sm:$0xff]  ;;  %v308_v7 = vld [vmem:[#allocation5] sm:$0xff]  ;;  %v192_v13 = vand.u32 127, %v191_v12  ;;  %vm171_vm13 = vcmask 125952  }
  0x13   :  { %v68_v8 = vld [vmem:[#allocation2] sm:$0xff]  ;;  %v69_v9 = vld [vmem:[#allocation2 + $0x8] sm:$0xff]  ;;  %v151_v33 = vld [vmem:[#allocation7] sm:$0x3] }
  0x14   :  { %v70_v10 = vpack.c.bf16 %v69_v9, %v68_v8  ;;  %v173_v11 = vld [vmem:[%s570_s3] sm:$0x3]  ;;  %vm203_vm0 = vcmp.ge.s32.totalorder %v192_v13, 32  ;;  %vm204_vm1 = vcmp.lt.s32.totalorder %v192_v13, 64  ;;  %vm214_vm2 = vcmp.ge.s32.totalorder %v192_v13, 64  ;;  %s460_s3 = smov [#allocation8]  }
  0x15   :  { %136 = vmatpush.bf16.msra.mxu0 %v314_v1  ;;  %181 = vmatpush.bf16.xpose.msra.mxu2 %v173_v11  ;;  %vm215_vm3 = vcmp.lt.s32.totalorder %v192_v13, 96  ;;  %vm194_vm4 = vcmp.lt.s32.totalorder %v192_v13, 32  ;;  %vm512_vm5 = vmand %vm203_vm0, %vm204_vm1  ;;  %vm225_vm8 = vcmp.ge.s32.totalorder %v192_v13, 96  ;;  %s240_s15 = sshll.u32 %s460_s3, 4  ;;  %s241_s15 = int_to_ptr.vmem [resolvable:$true] %s240_s15 }
  0x16   :  { %vm516_vm6 = vmand %vm214_vm2, %vm215_vm3 }
  0x17   :  { %vm520_vm7 = vmpackc.low %vm194_vm4, %vm194_vm4 }
  0x18   :  { %vm208_vm9 = vmpackc.low %vm512_vm5, %vm512_vm5 }
  0x19   :  { %137 = vmatpush.bf16.msra.mxu0 %v313_v2  ;;  %vm219_vm10 = vmpackc.low %vm516_vm6, %vm516_vm6 }
  0x1a   :  { %vm530_vm11 = vmpackc.low %vm225_vm8, %vm225_vm8 }
  0x1d   :  { %138 = vmatpush.bf16.msra.mxu0 %v312_v3 }
  0x21   :  { %139 = vmatpush.bf16.msra.mxu0 %v311_v4 }
  0x25   :  { %140 = vmatpush.bf16.msra.mxu0 %v310_v5 }
  0x29   :  { %141 = vmatpush.bf16.msra.mxu0 %v309_v6 }
  0x2d   :  { %142 = vmatpush.bf16.msra.mxu0 %v308_v7 }
  0x30   :  { %143 = vmatmul.bf16.vlgmr.msra.gmra.mxu0 %v70_v10 }
  0xad   :  { %v144_v17 = vpop.f32.mrf.mxu0 }
  0xae   :  { %v149_v18 = vpack.c.bf16 %v144_v17, %v144_v17 }
  0xb0   :  { %v199_v20 = vsel %vm520_vm7, %v149_v18, 0  ;;  %v209_v21 = vsel %vm208_vm9, %v149_v18, 0  ;;  %v220_v22 = vsel %vm219_vm10, %v149_v18, 0  ;;  %v231_v23 = vsel %vm530_vm11, %v149_v18, 0 }
  0xb1   :  { %201 = vst [vmem:[#allocation8] sm:$0xf] %v199_v20  ;;  %v154_v30 = vunpack.c.l.b16 %v149_v18 }
  0xb2   :  { %212 = vst [vmem:[#allocation8 + $0x8] sm:$0xf] %v209_v21 }
  0xb3   :  { %223 = vst [vmem:[#allocation8 + $0x10] sm:$0xf] %v220_v22 }
  0xb4   :  { %234 = vst [vmem:[#allocation8 + $0x18] sm:$0xf] %v231_v23 }
  0xb5   :  { %v146_v24 = vpop.f32.mrf.mxu0 }
  0xb6   :  { %v150_v25 = vpack.c.bf16 %v146_v24, %v146_v24 }
  0xb8   :  { %v200_v26 = vsel %vm520_vm7, %v150_v25, 0  ;;  %v210_v27 = vsel %vm208_vm9, %v150_v25, 0  ;;  %v221_v28 = vsel %vm219_vm10, %v150_v25, 0  ;;  %v232_v29 = vsel %vm530_vm11, %v150_v25, 0 }
  0xb9   :  { %202 = vst [vmem:[#allocation8 + $0x4] sm:$0xf] %v200_v26  ;;  %v155_v31 = vunpack.c.l.b16 %v150_v25 }
  0xba   :  { %213 = vst [vmem:[#allocation8 + $0xc] sm:$0xf] %v210_v27 }
  0xbb   :  { %224 = vst [vmem:[#allocation8 + $0x14] sm:$0xf] %v221_v28  ;;  %v156_v32 = vpack.c.b16 %v155_v31, %v154_v30 }
  0xbc   :  { %235 = vst [vmem:[#allocation8 + $0x1c] sm:$0xf] %v232_v29 }
  0xbd   :  { %165 = vmatpush.bf16.xpose.msra.mxu1 %v156_v32  ;;  %182 = vmatmul.bf16.vlgmr.msra.gmra.mxu2 %v156_v32  ;;  %248 = dma.vmem_to_hbm [thread:$0]  %s241_s15, 512, %s243_s18, [#allocation4], %s454_s29, %s454_s29, %s455_s30  }
  0xc4   :  { %166 = vmatmul.bf16.vlgmr.msra.gmra.mxu1 %v151_v33 }
 0x140   :  { %v183_v34 = vpop.f32.mrf.mxu2 }
 0x141   :  { %189 = vst.msk [vmem:[%s573_s6] sm:$0xff] %vm188_vm12, %v183_v34  ;;  %v167_v35 = vpop.f32.mrf.mxu1 }
 0x142   :  { %172 = vst.msk [vmem:[#allocation9] sm:$0xf] %vm171_vm13, %v167_v35 }
 0x143   :  { %259 = dma.vmem_to_hbm [thread:$0]  %s255_s20, 64, %s257_s23, [#allocation10]  }
 0x148   :  { %v185_v36 = vpop.f32.mrf.mxu2 }
 0x149   :  { %190 = vst.msk [vmem:[%s573_s6 + $0x8] sm:$0xff] %vm188_vm12, %v185_v36  ;;  %v169_v37 = vpop.f32.mrf.mxu1 }
 0x14a   :  { %449 = dma.done.wait [#allocation4], 512  }
 0x14b   :  { %450 = vsyncadd [#allocation4], 4294966784 }
 0x14c   :  { %451 = dma.done.wait [#allocation10], 64  }
 0x14d   :  { %452 = vsyncadd [#allocation10], 4294967232 }
 0x14e   :  { %272 = vsyncpa [#allocation3], 1 }
 0x14f   :  { %273 = vsyncpa [#allocation6], 1 }
 0x150   :  { %274 = vsyncpa [#allocation4], 1 }
 0x151   :  { %275 = vsyncpa [#allocation10], 1 }

</bundles_post_ra>
